<compile_context>
chip_gen: v7x
topology: tpu7x:2x2x1
jax: 0.10.0
libtpu: 0.0.40
codegen_flags: <defaults>
</compile_context>

<pallas_src>
import functools

import numpy as np
import jax
import jax.numpy as jnp
from jax import lax
from jax.experimental import pallas as pl
from jax.experimental.pallas import tpu as pltpu


def _mcc_kernel(*refs, k, n_class, inv_t, steps, block_r, n_sample,
                need_mask, mm_bf16):
    """One grid step: partial class-confusion accumulation over a row tile."""
    if k > 1:
        x_ref, b_ref, o_ref, acc_ref = refs
    else:
        x_ref, o_ref, acc_ref = refs
        b_ref = None

    j = pl.program_id(1)
    L = k * n_class

    @pl.when(j == 0)
    def _init():
        acc_ref[...] = jnp.zeros_like(acc_ref)

    x = x_ref[...].astype(jnp.float32)                       # (block_r, L)

    valid = None
    if need_mask:
        # Logical (unclamped) block index; ghost / padded samples are masked.
        blk = pl.program_id(0) * steps + j
        row = lax.broadcasted_iota(jnp.int32, (block_r, L), 0)
        lane = lax.broadcasted_iota(jnp.int32, (block_r, L), 1)
        sample = (blk * block_r + row) * k + lane // n_class
        valid = sample < n_sample
        x = jnp.where(valid, x, 0.0)                         # keeps garbage finite

    z = x * inv_t
    # Row max is shared by all k packed samples in a row; softmax is invariant
    # to any per-sample constant, so this is exact.  Only pathologically large
    # logit spreads (> ~87*t between co-packed samples) lose precision (guarded
    # against NaN below).
    z = z - jnp.max(z, axis=1, keepdims=True)
    e = jnp.exp(z)

    def seg_sum(v):
        # Per-sample sum, broadcast back over that sample's class lanes.
        if k == 1:
            return jnp.sum(v, axis=1, keepdims=True)
        # One MXU matmul vs. the block-diagonal 0/1 matrix = segmented reduce
        # AND broadcast, on fully lane-dense data.
        return lax.dot_general(v, b_ref[...], (((1,), (0,)), ((), ())),
                               preferred_element_type=jnp.float32)

    denom = jnp.maximum(seg_sum(e), 1e-30)
    p = e / denom
    # Entropy in torch's exact eps form: -sum(p * log(p + 1e-5)).
    neg_ent = seg_sum(p * jnp.log(p + 1e-5))                 # == -entropy
    w = 1.0 + jnp.exp(neg_ent)                               # 1 + exp(-entropy)
    weighted = p * w
    if need_mask:
        weighted = jnp.where(valid, weighted, 0.0)

    lhs, rhs = weighted, p
    if mm_bf16:
        lhs = lhs.astype(jnp.bfloat16)
        rhs = rhs.astype(jnp.bfloat16)
    # Partial CCM: contract the sample axis of both operands on the MXU
    # (no explicit transpose of the tile).
    acc_ref[...] += lax.dot_general(lhs, rhs, (((0,), (0,)), ((), ())),
                                    preferred_element_type=jnp.float32)

    @pl.when(j == pl.num_programs(1) - 1)
    def _emit():
        o_ref[0] = acc_ref[...]


def class_confusion_loss(output, t, *, block_rows=None, num_slices=None):
    """Pallas implementation of ClassConfusionLoss.forward.  Returns scalar f32."""
    n_sample, n_class = output.shape

    # ---- small-class lane packing (free row-major reshape) ------------------
    k = 128 // n_class if (n_class < 128 and 128 % n_class == 0) else 1
    L = k * n_class

    x = output
    pad = 0
    if k > 1:
        pad = (-n_sample) % k
        if pad:
            # TODO(synk): avoid this whole-array pad copy by handling the <k
            # tail rows in a separate tiny call if it ever matters.
            x = jnp.pad(x, ((0, pad), (0, 0)))
        x = x.reshape((n_sample + pad) // k, L)
    R_total = x.shape[0]

    # ---- generation-aware tile sizing / VMEM budget --------------------------
    try:
        vmem_cap = int(pltpu.get_tpu_info().vmem_capacity_bytes)
    except Exception:
        vmem_cap = 64 * 1024 * 1024                      # v7x-safe default
    tile_target = (4 << 20) if vmem_cap >= (100 << 20) else (2 << 20)

    row_bytes = L * 4
    if block_rows is None:
        block_rows = max(8, tile_target // row_bytes)
    if block_rows >= R_total:
        block_r = R_total                                # full-extent block: legal
    else:
        block_r = max(8, (block_rows // 8) * 8)          # sublane-aligned

    num_blocks = pl.cdiv(R_total, block_r)
    if num_slices is None:
        num_slices = 2 if num_blocks >= 2 else 1         # v7x: partial CCM per core
    num_slices = max(1, min(num_slices, num_blocks))
    steps = pl.cdiv(num_blocks, num_slices)

    covered = num_slices * steps * block_r * k
    need_mask = covered != n_sample
    mm_bf16 = (k == 1 and n_class >= 1024)

    # VMEM estimate: double-buffered input tile + live f32 intermediates +
    # block-diag matrix + (C,C) accumulator + output block.
    # TODO(synk): class-blocked (Cb, C) accumulator for very large n_class
    # (C^2 f32 approaching v7x's 64 MiB).
    tile_bytes = block_r * L * x.dtype.itemsize
    est = (2 * tile_bytes + 6 * block_r * L * 4
           + (2 * L * L * 4 if k > 1 else 0) + 3 * L * L * 4 + (1 << 20))
    vmem_limit = int(min(max(est * 5 // 4, 32 << 20), vmem_cap - (4 << 20)))
    vmem_limit = max(vmem_limit, 16 << 20)

    kernel = functools.partial(
        _mcc_kernel, k=k, n_class=n_class, inv_t=1.0 / float(t), steps=steps,
        block_r=block_r, n_sample=n_sample, need_mask=need_mask, mm_bf16=mm_bf16)

    def x_index_map(si, ji):
        # Clamp ghost blocks (when num_blocks % num_slices != 0) to a valid
        # block; their contribution is removed by the sample-index mask.
        return (jnp.minimum(si * steps + ji, num_blocks - 1), 0)

    in_specs = [pl.BlockSpec((block_r, L), x_index_map)]
    args = [x]
    if k > 1:
        seg = np.arange(L) // n_class
        blockdiag = (seg[:, None] == seg[None, :]).astype(np.float32)
        in_specs.append(pl.BlockSpec((L, L), lambda si, ji: (0, 0)))  # resident
        args.append(jnp.asarray(blockdiag))

    compiler_params_cls = (getattr(pltpu, "CompilerParams", None)
                           or getattr(pltpu, "TPUCompilerParams"))

    partials = pl.pallas_call(
        kernel,
        out_shape=jax.ShapeDtypeStruct((num_slices, L, L), jnp.float32),
        grid_spec=pltpu.PrefetchScalarGridSpec(
            num_scalar_prefetch=0,
            grid=(num_slices, steps),
            in_specs=in_specs,
            out_specs=pl.BlockSpec((1, L, L), lambda si, ji: (si, 0, 0)),
            scratch_shapes=[pltpu.VMEM((L, L), jnp.float32)],
        ),
        compiler_params=compiler_params_cls(
            dimension_semantics=("parallel", "arbitrary"),
            vmem_limit_bytes=vmem_limit,
        ),
    )(*args)

    # ---- tiny finalize in plain JAX (exact, no matmuls) ----------------------
    M = jnp.sum(partials, axis=0)                        # (L, L)
    M4 = M.reshape(k, n_class, k, n_class)
    idx = jnp.arange(k)
    ccm = M4[idx, :, idx, :].sum(axis=0)                 # fold packed segments
    # torch: ccm / sum(ccm, dim=1) -> the (C,) row-sum broadcasts over the LAST
    # axis (element [i, j] divided by rowsum[j]).
    ccm = ccm / jnp.sum(ccm, axis=1)
    return (jnp.sum(ccm) - jnp.trace(ccm)) / n_class


def _reference(output, t):
    # Pure-JAX mirror of the PyTorch forward (f32, exact matmul precision).
    output = output.astype(jnp.float32)
    n_sample, n_class = output.shape
    sm = jax.nn.softmax(output / t, axis=1)
    ent = -jnp.sum(sm * jnp.log(sm + 1e-5), axis=1)
    w = 1.0 + jnp.exp(-ent)
    w = (n_sample * w / jnp.sum(w))[:, None]
    ccm = jnp.matmul((sm * w).T, sm, precision=jax.lax.Precision.HIGHEST)
    ccm = ccm / jnp.sum(ccm, axis=1)
    return (jnp.sum(ccm) - jnp.trace(ccm)) / n_class


if __name__ == "__main__":
    t = 2.5
    keys = jax.random.split(jax.random.PRNGKey(0), 6)

    def check(x, tol=2e-5, **kw):
        out = jax.block_until_ready(class_confusion_loss(x, t, **kw))
        ref = jax.block_until_ready(_reference(x, t))
        assert jnp.allclose(out, ref, rtol=tol, atol=tol), (float(out), float(ref))

    # 1) small n_class -> packed path (k=8), single full block, mask-free.
    check(jax.random.normal(keys[0], (64, 16), jnp.float32))
    # 2) ragged sample count with packing (50 % 8 != 0) -> padded + masked.
    check(jax.random.normal(keys[1], (50, 16), jnp.float32))
    # 3) multi-block grid, 2 parallel slices, mask-free accumulation.
    check(jax.random.normal(keys[2], (256, 16), jnp.float32), block_rows=8)
    # 4) odd block count -> ghost block clamped + masked.
    check(jax.random.normal(keys[3], (192, 16), jnp.float32), block_rows=8)
    # 5) n_class not a divisor of 128 -> unpacked fallback path.
    check(jax.random.normal(keys[4], (96, 24), jnp.float32))
    # 6) bf16 logits (half the HBM bytes); reference on the same bf16 values.
    xb = jax.random.normal(keys[5], (64, 16), jnp.float32).astype(jnp.bfloat16)
    out = jax.block_until_ready(class_confusion_loss(xb, t))
    ref = jax.block_until_ready(_reference(xb.astype(jnp.float32), t))
    assert jnp.allclose(out, ref, rtol=2e-5, atol=2e-5), (float(out), float(ref))

    print("KERNEL_OK")
</pallas_src>

<mosaic_0001>
module attributes {stable_mosaic.version = 11 : i64} {
  func.func @_mcc_kernel(%arg0: i32, %arg1: i32, %arg2: memref<8x128xf32, #tpu.memory_space<vmem>>, %arg3: memref<128x128xf32, #tpu.memory_space<vmem>>, %arg4: memref<1x128x128xf32, #tpu.memory_space<vmem>>, %arg5: memref<128x128xf32, #tpu.memory_space<vmem>>) attributes {dimension_semantics = [#tpu.dimension_semantics<parallel>, #tpu.dimension_semantics<arbitrary>], iteration_bounds = array<i64: 1, 1>, scalar_prefetch = 0 : i64, scratch_operands = 1 : i64, tpu.core_type = #tpu.core_type<tc>, window_params = [{transform_indices = @transform_0, window_bounds = array<i64: 8, 128>}, {pipeline_mode = #tpu.pipeline_mode<synchronous>, transform_indices = @transform_1, window_bounds = array<i64: 128, 128>}, {transform_indices = @transform_2, window_bounds = array<i64: 1, 128, 128>}]} {
    %c0_i32 = arith.constant 0 : i32
    %0 = arith.cmpi eq, %arg1, %c0_i32 : i32
    %1 = arith.extui %0 : i1 to i32
    %c0_i32_0 = arith.constant 0 : i32
    %2 = arith.cmpi ne, %1, %c0_i32_0 : i32
    scf.if %2 {
      %cst_19 = arith.constant 0.000000e+00 : f32
      %33 = vector.broadcast %cst_19 : f32 to vector<128x128xf32>
      %c0_20 = arith.constant 0 : index
      %c0_21 = arith.constant 0 : index
      %34 = vector.load %arg5[%c0_20, %c0_21] : memref<128x128xf32, #tpu.memory_space<vmem>>, vector<128x128xf32>
      tpu.vector_store %arg5[%c0_20, %c0_21], %33 {strides = array<i32>} : memref<128x128xf32, #tpu.memory_space<vmem>>, vector<128x128xf32>,
    } else {
    }
    %c0 = arith.constant 0 : index
    %c0_1 = arith.constant 0 : index
    %3 = vector.load %arg2[%c0, %c0_1] : memref<8x128xf32, #tpu.memory_space<vmem>>, vector<8x128xf32>
    %cst = arith.constant 4.000000e-01 : f32
    %4 = vector.broadcast %cst : f32 to vector<8x128xf32>
    %5 = arith.mulf %3, %4 : vector<8x128xf32>
    %cst_2 = arith.constant dense<0xFF800000> : vector<8xf32>
    %6 = vector.multi_reduction <maximumf>, %5, %cst_2 [1] : vector<8x128xf32> to vector<8xf32>
    %7 = vector.shape_cast %6 : vector<8xf32> to vector<8x1xf32>
    %8 = vector.broadcast %7 : vector<8x1xf32> to vector<8x128xf32>
    %9 = arith.subf %5, %8 : vector<8x128xf32>
    %10 = math.exp %9 : vector<8x128xf32>
    %c0_3 = arith.constant 0 : index
    %c0_4 = arith.constant 0 : index
    %11 = vector.load %arg3[%c0_3, %c0_4] : memref<128x128xf32, #tpu.memory_space<vmem>>, vector<128x128xf32>
    %cst_5 = arith.constant dense<0.000000e+00> : vector<8x128xf32>
    %12 = tpu.matmul %10, %11, %cst_5 {dimension_numbers = #tpu.dot_dimension_numbers<[1], [0], [0], [1], [0, 0, 1, 1], [], []>} : vector<8x128xf32>, vector<128x128xf32>, vector<8x128xf32> -> vector<8x128xf32>
    %cst_6 = arith.constant 1.000000e-30 : f32
    %13 = vector.broadcast %cst_6 : f32 to vector<8x128xf32>
    %14 = arith.maximumf %12, %13 : vector<8x128xf32>
    %15 = arith.divf %10, %14 : vector<8x128xf32>
    %cst_7 = arith.constant 9.99999974E-6 : f32
    %16 = vector.broadcast %cst_7 : f32 to vector<8x128xf32>
    %17 = arith.addf %15, %16 : vector<8x128xf32>
    %18 = math.log %17 : vector<8x128xf32>
    %19 = arith.mulf %15, %18 : vector<8x128xf32>
    %c0_8 = arith.constant 0 : index
    %c0_9 = arith.constant 0 : index
    %20 = vector.load %arg3[%c0_8, %c0_9] : memref<128x128xf32, #tpu.memory_space<vmem>>, vector<128x128xf32>
    %cst_10 = arith.constant dense<0.000000e+00> : vector<8x128xf32>
    %21 = tpu.matmul %19, %20, %cst_10 {dimension_numbers = #tpu.dot_dimension_numbers<[1], [0], [0], [1], [0, 0, 1, 1], [], []>} : vector<8x128xf32>, vector<128x128xf32>, vector<8x128xf32> -> vector<8x128xf32>
    %22 = math.exp %21 : vector<8x128xf32>
    %cst_11 = arith.constant 1.000000e+00 : f32
    %23 = vector.broadcast %cst_11 : f32 to vector<8x128xf32>
    %24 = arith.addf %23, %22 : vector<8x128xf32>
    %25 = arith.mulf %15, %24 : vector<8x128xf32>
    %c0_12 = arith.constant 0 : index
    %c0_13 = arith.constant 0 : index
    %26 = vector.load %arg5[%c0_12, %c0_13] : memref<128x128xf32, #tpu.memory_space<vmem>>, vector<128x128xf32>
    %cst_14 = arith.constant dense<0.000000e+00> : vector<128x128xf32>
    %27 = tpu.matmul %25, %15, %cst_14 {dimension_numbers = #tpu.dot_dimension_numbers<[0], [0], [1], [1], [0, 1, 1, 1], [], []>} : vector<8x128xf32>, vector<8x128xf32>, vector<128x128xf32> -> vector<128x128xf32>
    %28 = arith.addf %26, %27 : vector<128x128xf32>
    %c0_15 = arith.constant 0 : index
    %c0_16 = arith.constant 0 : index
    %29 = vector.load %arg5[%c0_15, %c0_16] : memref<128x128xf32, #tpu.memory_space<vmem>>, vector<128x128xf32>
    tpu.vector_store %arg5[%c0_15, %c0_16], %28 {strides = array<i32>} : memref<128x128xf32, #tpu.memory_space<vmem>>, vector<128x128xf32>,
    %c0_i32_17 = arith.constant 0 : i32
    %30 = arith.cmpi eq, %arg1, %c0_i32_17 : i32
    %31 = arith.extui %30 : i1 to i32
    %c0_i32_18 = arith.constant 0 : i32
    %32 = arith.cmpi ne, %31, %c0_i32_18 : i32
    scf.if %32 {
      %c0_19 = arith.constant 0 : index
      %c0_20 = arith.constant 0 : index
      %33 = vector.load %arg5[%c0_19, %c0_20] : memref<128x128xf32, #tpu.memory_space<vmem>>, vector<128x128xf32>
      %c0_21 = arith.constant 0 : index
      %c0_22 = arith.constant 0 : index
      %c0_23 = arith.constant 0 : index
      %34 = vector.load %arg4[%c0_21, %c0_22, %c0_23] : memref<1x128x128xf32, #tpu.memory_space<vmem>>, vector<1x128x128xf32>
      %35 = vector.shape_cast %34 : vector<1x128x128xf32> to vector<128x128xf32>
      %36 = vector.shape_cast %33 : vector<128x128xf32> to vector<1x128x128xf32>
      tpu.vector_store %arg4[%c0_21, %c0_22, %c0_23], %36 {strides = array<i32>} : memref<1x128x128xf32, #tpu.memory_space<vmem>>, vector<1x128x128xf32>,
    } else {
    }
    return
  }
  func.func @transform_0(%arg0: i32, %arg1: i32) -> (i32, i32) {
    %c1_i32 = arith.constant 1 : i32
    %0 = arith.muli %arg0, %c1_i32 : i32
    %1 = arith.addi %0, %arg1 : i32
    %c0_i32 = arith.constant 0 : i32
    %2 = arith.minsi %1, %c0_i32 : i32
    %c0_i32_0 = arith.constant 0 : i32
    %c0_i32_1 = arith.constant 0 : i32
    return %2, %c0_i32_0 : i32, i32
  }
  func.func @transform_1(%arg0: i32, %arg1: i32) -> (i32, i32) {
    %c0_i32 = arith.constant 0 : i32
    %c0_i32_0 = arith.constant 0 : i32
    %c0_i32_1 = arith.constant 0 : i32
    return %c0_i32, %c0_i32_0 : i32, i32
  }
  func.func @transform_2(%arg0: i32, %arg1: i32) -> (i32, i32, i32) {
    %c0_i32 = arith.constant 0 : i32
    %c0_i32_0 = arith.constant 0 : i32
    %c0_i32_1 = arith.constant 0 : i32
    return %arg0, %c0_i32, %c0_i32_0 : i32, i32, i32
  }
}

</mosaic_0001>

<bundles_post_ra>
// kernel: tpu_custom_call.1
= control target key start
LH: loop header
LB: loop body
LE: loop exit
PB: predicated region body
PF: predicated region fallthrough
CT: control target
= control target key end

     0   :  { %7 = vsyncpa [#allocation4], 0  ;;  %s958_s0 = inlined_call_operand.hbm [shape: f32[8,128], index: 0, kind: input, shape index: {}]   ;;  %s959_s1 = inlined_call_operand.hbm [shape: f32[128,128], index: 1, kind: input, shape index: {}]   ;;  %s960_s2 = inlined_call_operand.hbm [shape: f32[1,128,128], index: 2, kind: output, shape index: {}]  }
   0x1   :  { %8 = vsyncpa [#allocation7], 0 }
   0x2   :  { %9 = vsyncpa [#allocation5], 0  ;;  %s870_s9 = smov [#allocation3]   ;;  %s871_s11 = smov [#allocation6]  }
   0x3   :  { %s21_s10 = sshll.u32 %s870_s9, 4  ;;  %s30_s12 = sshll.u32 %s871_s11, 4  ;;  %s22_s10 = int_to_ptr.vmem [resolvable:$true] %s21_s10  ;;  %s893_s12 = int_to_ptr.vmem [resolvable:$true] %s30_s12 }
   0x4   :  { %s798_s15 = scalar_lea.hbm %s958_s0, 128 }
   0x5   :  { %p799_p0 = scmp.ne.s32.totalorder %s958_s0, %s798_s15  ;;  %p802_p1 = scmp.lt.u32.totalorder %s798_s15, %s958_s0 }
   0x7   :  { %p804_p2 = pnand %p802_p1, %p799_p0 }
   0x9   :  { %807 = shalt.err (!%p804_p2)
}
   0xa   :  { %s808_s20 = scalar_lea.vmem %s22_s10, 128  ;;  %p813_p4 = scmp.lt.s32.totalorder %s22_s10, %s22_s10 }
   0xb   :  { %p809_p3 = scmp.ne.s32.totalorder %s22_s10, %s808_s20  ;;  %p814_p5 = scmp.lt.s32.totalorder %s808_s20, %s808_s20 }
   0xd   :  { %p815_p6 = por %p814_p5, %p813_p4 }
   0xf   :  { %p816_p7 = pnand %p815_p6, %p809_p3 }
  0x11   :  { %819 = shalt.err (!%p816_p7)
}
  0x12   :  { %24 = dma.hbm_to_vmem [thread:$0]  %s958_s0, 128, %s22_s10, [#allocation4]  }
  0x13   :  { %s820_s25 = scalar_lea.hbm %s959_s1, 2048 }
  0x14   :  { %p821_p8 = scmp.ne.s32.totalorder %s959_s1, %s820_s25  ;;  %p824_p9 = scmp.lt.u32.totalorder %s820_s25, %s959_s1 }
  0x16   :  { %p826_p10 = pnand %p824_p9, %p821_p8 }
  0x18   :  { %829 = shalt.err (!%p826_p10)
}
  0x19   :  { %s830_s30 = scalar_lea.vmem %s893_s12, 2048  ;;  %p835_p12 = scmp.lt.s32.totalorder %s893_s12, %s893_s12 }
  0x1a   :  { %p831_p11 = scmp.ne.s32.totalorder %s893_s12, %s830_s30  ;;  %p836_p13 = scmp.lt.s32.totalorder %s830_s30, %s830_s30 }
  0x1c   :  { %p837_p0 = por %p836_p13, %p835_p12 }
  0x1e   :  { %p838_p1 = pnand %p837_p0, %p831_p11 }
  0x20   :  { %841 = shalt.err (!%p838_p1)
}
  0x21   :  { %s872_s0 = smov 128   ;;  %s873_s3 = smov 8  }
  0x22   :  { %36 = dma.hbm_to_vmem [thread:$0]  %s959_s1, 2048, %s893_s12, [#allocation7], %s872_s0, %s872_s0, %s873_s3  }
  0x23   :  { %864 = dma.done.wait [#allocation4], 128  }
  0x24   :  { %865 = vsyncadd [#allocation4], 4294967168 }
  0x25   :  { %866 = dma.done.wait [#allocation7], 2048  }
  0x26   :  { %867 = vsyncadd [#allocation7], 4294965248  ;;  %v874_v0 = vmov 0.0|0.0   ;;  %v66_v1 = vld [vmem:[#allocation3] sm:$0xff]  ;;  %v73_v2 = vld [vmem:[#allocation6] sm:$0xff]  ;;  %vm875_vm0 = vmmov 0  }
  0x27   :  { %732 = vmatprep.subr.bf16.mxu0 %v874_v0  ;;  %756 = vmatprep.subr.bf16.mxu1 %v874_v0  ;;  %v74_v3 = vld [vmem:[#allocation6 + $0x8] sm:$0xff]  ;;  %v67_v4 = vmul.f32 0.4, %v66_v1  ;;  %v75_v6 = vld [vmem:[#allocation6 + $0x10] sm:$0xff]  ;;  %v76_v7 = vld [vmem:[#allocation6 + $0x18] sm:$0xff]  ;;  %v876_v23 = vmov 0.0  }
  0x28   :  { %v733_v5 = vpack.c.bf16 %v74_v3, %v73_v2  ;;  %v736_v8 = vpack.c.bf16 %v76_v7, %v75_v6  ;;  %v77_v9 = vld [vmem:[#allocation6 + $0x20] sm:$0xff]  ;;  %v78_v10 = vld [vmem:[#allocation6 + $0x28] sm:$0xff]  ;;  %v79_v12 = vld [vmem:[#allocation6 + $0x30] sm:$0xff]  ;;  %668 = vmatprep.mubr.msk.f32.mxu0 %vm875_vm0, %v876_v23  ;;  %703 = vmatprep.mubr.msk.f32.mxu1 %vm875_vm0, %v876_v23  ;;  %vm288_vm1 = vcmask 64512   ;;  %s877_s1 = smov [#allocation8]  }
  0x29   :  { %68 = vmax.xlane.f32.xlu0 %v67_v4  ;;  %v739_v11 = vpack.c.bf16 %v78_v10, %v77_v9  ;;  %v80_v13 = vld [vmem:[#allocation6 + $0x38] sm:$0xff]  ;;  %v81_v15 = vld [vmem:[#allocation6 + $0x40] sm:$0xff]  ;;  %v82_v16 = vld [vmem:[#allocation6 + $0x48] sm:$0xff]  ;;  %s554_s6 = sshll.u32 %s877_s1, 4  ;;  %s555_s6 = int_to_ptr.vmem [resolvable:$true] %s554_s6 }
  0x2a   :  { %734 = vmatpush3.bf16.msra.mxu0 %v733_v5  ;;  %758 = vmatpush3.bf16.msra.mxu1 %v733_v5  ;;  %v742_v14 = vpack.c.bf16 %v80_v13, %v79_v12  ;;  %v745_v17 = vpack.c.bf16 %v82_v16, %v81_v15  ;;  %v83_v18 = vld [vmem:[#allocation6 + $0x50] sm:$0xff]  ;;  %v84_v19 = vld [vmem:[#allocation6 + $0x58] sm:$0xff]  ;;  %v85_v21 = vld [vmem:[#allocation6 + $0x60] sm:$0xff]  ;;  %s842_s7 = scalar_lea.vmem %s555_s6, 2048  ;;  %p847_p3 = scmp.lt.s32.totalorder %s555_s6, %s555_s6 }
  0x2b   :  { %735 = vmatprep.subr.bf16.mxu0 %v874_v0  ;;  %759 = vmatprep.subr.bf16.mxu1 %v874_v0  ;;  %v748_v20 = vpack.c.bf16 %v84_v19, %v83_v18  ;;  %v86_v22 = vld [vmem:[#allocation6 + $0x68] sm:$0xff]  ;;  %v87_v25 = vld [vmem:[#allocation6 + $0x70] sm:$0xff]  ;;  %v88_v26 = vld [vmem:[#allocation6 + $0x78] sm:$0xff]  ;;  %p843_p2 = scmp.ne.s32.totalorder %s555_s6, %s842_s7  ;;  %p848_p4 = scmp.lt.s32.totalorder %s842_s7, %s842_s7 }
  0x2c   :  { %v751_v24 = vpack.c.bf16 %v86_v22, %v85_v21  ;;  %v754_v27 = vpack.c.bf16 %v88_v26, %v87_v25 }
  0x2d   :  { %p849_p5 = por %p848_p4, %p847_p3 }
  0x2e   :  { %737 = vmatpush3.bf16.msra.mxu0 %v736_v8  ;;  %761 = vmatpush3.bf16.msra.mxu1 %v736_v8 }
  0x2f   :  { %738 = vmatprep.subr.bf16.mxu0 %v874_v0  ;;  %762 = vmatprep.subr.bf16.mxu1 %v874_v0  ;;  %p850_p6 = pnand %p849_p5, %p843_p2 }
  0x32   :  { %740 = vmatpush3.bf16.msra.mxu0 %v739_v11  ;;  %764 = vmatpush3.bf16.msra.mxu1 %v739_v11 }
  0x33   :  { %741 = vmatprep.subr.bf16.mxu0 %v874_v0  ;;  %765 = vmatprep.subr.bf16.mxu1 %v874_v0 }
  0x36   :  { %743 = vmatpush3.bf16.msra.mxu0 %v742_v14  ;;  %767 = vmatpush3.bf16.msra.mxu1 %v742_v14 }
  0x37   :  { %744 = vmatprep.subr.bf16.mxu0 %v874_v0  ;;  %768 = vmatprep.subr.bf16.mxu1 %v874_v0 }
  0x3a   :  { %746 = vmatpush3.bf16.msra.mxu0 %v745_v17  ;;  %770 = vmatpush3.bf16.msra.mxu1 %v745_v17 }
  0x3b   :  { %747 = vmatprep.subr.bf16.mxu0 %v874_v0  ;;  %771 = vmatprep.subr.bf16.mxu1 %v874_v0 }
  0x3e   :  { %749 = vmatpush3.bf16.msra.mxu0 %v748_v20  ;;  %773 = vmatpush3.bf16.msra.mxu1 %v748_v20 }
  0x3f   :  { %750 = vmatprep.subr.bf16.mxu0 %v874_v0  ;;  %774 = vmatprep.subr.bf16.mxu1 %v874_v0 }
  0x42   :  { %752 = vmatpush3.bf16.msra.mxu0 %v751_v24  ;;  %776 = vmatpush3.bf16.msra.mxu1 %v751_v24 }
  0x43   :  { %753 = vmatprep.subr.bf16.mxu0 %v874_v0  ;;  %777 = vmatprep.subr.bf16.mxu1 %v874_v0 }
  0x46   :  { %755 = vmatpush3.bf16.msra.mxu0 %v754_v27  ;;  %779 = vmatpush3.bf16.msra.mxu1 %v754_v27 }
  0xb6   :  { %v69_v28 = vpop.xlane.xlu0 %68 }
  0xb7   :  { %v70_v29 = vsub.f32 %v67_v4, %v69_v28 }
  0xb9   :  { %v71_v30 = vmul.f32 1.442695, %v70_v29 }
  0xbb   :  { %790 = vpow2.f32 %v71_v30 }
  0xc5   :  { %v791_v31 = vpop.eup %790 }
  0xc6   :  { %669 = vmatmul.mubr.f32.vlgmr.msra.gmra.mrb[0].mxu0 %v791_v31 }
 0x199   :  { %v155_v32 = vpop.f32.mrb[0].mxu0 }
 0x19a   :  { %v159_v33 = vmax.f32 %v155_v32, 1e-30  ;;  %v670_v34 = vpop.f32.mrb[1].mxu0 }
 0x19c   :  { %792 = vrcp.f32 %v159_v33 }
 0x1a6   :  { %v793_v35 = vpop.eup %792 }
 0x1a7   :  { %v161_v36 = vmul.f32 %v793_v35, %v791_v31 }
 0x1a9   :  { %706 = vmatprep.subr.mxu0 %v161_v36  ;;  %780 = vmatprep.subr.mxu1 %v161_v36  ;;  %v162_v37 = vadd.f32 1e-05, %v161_v36 }
 0x1aa   :  { %707 = vmatpush3.msra.mxu0 %v161_v36 }
 0x1ab   :  { %794 = vlog2.f32 %v162_v37 }
 0x1b5   :  { %v795_v38 = vpop.eup %794 }
 0x1b6   :  { %v164_v39 = vmul.f32 0.6931472, %v795_v38 }
 0x1b8   :  { %v165_v40 = vmul.f32 %v164_v39, %v161_v36 }
 0x1ba   :  { %704 = vmatmul.mubr.f32.vlgmr.msra.gmra.mrb[0].mxu1 %v165_v40 }
 0x1bb   :  { %781 = vmatpush3.msra.mxu1 %v161_v36 }
 0x28d   :  { %v232_v41 = vpop.f32.mrb[0].mxu1 }
 0x28e   :  { %v236_v42 = vmul.f32 1.442695, %v232_v41  ;;  %v705_v43 = vpop.f32.mrb[1].mxu1 }
 0x290   :  { %796 = vpow2.f32 %v236_v42 }
 0x29a   :  { %v797_v44 = vpop.eup %796 }
 0x29b   :  { %v238_v45 = vadd.f32 1.0, %v797_v44 }
 0x29d   :  { %v239_v46 = vmul.f32 %v238_v45, %v161_v36 }
 0x29f   :  { %256 = vxpose.xlu0.b32.start.end [1/1] (short) %v239_v46, 128 }
 0x31f   :  { %v272_v47 = vpop.trf.xlu0 }
 0x320   :  { %708 = vmatprep.mubr.msk.f32.mxu0 %vm288_vm1, %v272_v47 }
 0x323   :  { %v273_v48 = vpop.trf.xlu0 }
 0x324   :  { %709 = vmatmul.mubr.msk.f32.vlgmr.msra.gmra.mrb[2].mxu0 %vm288_vm1, %v273_v48 }
 0x327   :  { %v274_v49 = vpop.trf.xlu0 }
 0x328   :  { %711 = vmatprep.mubr.msk.f32.mxu0 %vm288_vm1, %v274_v49 }
 0x32b   :  { %v275_v50 = vpop.trf.xlu0 }
 0x32c   :  { %712 = vmatmul.mubr.msk.f32.gmra.mrb[4].mxu0 %vm288_vm1, %v275_v50 }
 0x32f   :  { %v276_v51 = vpop.trf.xlu0 }
 0x330   :  { %714 = vmatprep.mubr.msk.f32.mxu0 %vm288_vm1, %v276_v51 }
 0x333   :  { %v277_v52 = vpop.trf.xlu0 }
 0x334   :  { %715 = vmatmul.mubr.msk.f32.gmra.mrb[6].mxu0 %vm288_vm1, %v277_v52 }
 0x337   :  { %v278_v53 = vpop.trf.xlu0 }
 0x338   :  { %717 = vmatprep.mubr.msk.f32.mxu0 %vm288_vm1, %v278_v53 }
 0x33b   :  { %v279_v54 = vpop.trf.xlu0 }
 0x33c   :  { %718 = vmatmul.mubr.msk.f32.gmra.mrb[8].mxu0 %vm288_vm1, %v279_v54 }
 0x33f   :  { %v280_v55 = vpop.trf.xlu0 }
 0x340   :  { %720 = vmatprep.mubr.msk.f32.mxu1 %vm288_vm1, %v280_v55 }
 0x343   :  { %v281_v56 = vpop.trf.xlu0 }
 0x344   :  { %721 = vmatmul.mubr.msk.f32.vlgmr.msra.gmra.mrb[2].mxu1 %vm288_vm1, %v281_v56 }
 0x347   :  { %v282_v57 = vpop.trf.xlu0 }
 0x348   :  { %723 = vmatprep.mubr.msk.f32.mxu1 %vm288_vm1, %v282_v57 }
 0x34b   :  { %v283_v58 = vpop.trf.xlu0 }
 0x34c   :  { %724 = vmatmul.mubr.msk.f32.gmra.mrb[4].mxu1 %vm288_vm1, %v283_v58 }
 0x34f   :  { %v284_v59 = vpop.trf.xlu0 }
 0x350   :  { %726 = vmatprep.mubr.msk.f32.mxu1 %vm288_vm1, %v284_v59 }
 0x353   :  { %v285_v60 = vpop.trf.xlu0 }
 0x354   :  { %727 = vmatmul.mubr.msk.f32.gmra.mrb[6].mxu1 %vm288_vm1, %v285_v60 }
 0x357   :  { %v286_v61 = vpop.trf.xlu0 }
 0x358   :  { %729 = vmatprep.mubr.msk.f32.mxu1 %vm288_vm1, %v286_v61 }
 0x35b   :  { %v287_v62 = vpop.trf.xlu0 }
 0x35c   :  { %730 = vmatmul.mubr.msk.f32.gmra.mrb[8].mxu1 %vm288_vm1, %v287_v62 }
 0x3f7   :  { %v710_v63 = vpop.f32.mrb[2].mxu0 }
 0x3f8   :  { %534 = vst [vmem:[#allocation8 + $0x8] sm:$0xff] %v710_v63  ;;  %v403_v0 = vpop.f32.mrb[3].mxu0 }
 0x3f9   :  { %533 = vst [vmem:[#allocation8] sm:$0xff] %v403_v0 }
 0x3ff   :  { %v713_v1 = vpop.f32.mrb[4].mxu0 }
 0x400   :  { %536 = vst [vmem:[#allocation8 + $0x18] sm:$0xff] %v713_v1  ;;  %v413_v2 = vpop.f32.mrb[5].mxu0 }
 0x401   :  { %535 = vst [vmem:[#allocation8 + $0x10] sm:$0xff] %v413_v2 }
 0x407   :  { %v716_v3 = vpop.f32.mrb[6].mxu0 }
 0x408   :  { %538 = vst [vmem:[#allocation8 + $0x28] sm:$0xff] %v716_v3  ;;  %v423_v4 = vpop.f32.mrb[7].mxu0 }
 0x409   :  { %537 = vst [vmem:[#allocation8 + $0x20] sm:$0xff] %v423_v4 }
 0x40f   :  { %v719_v5 = vpop.f32.mrb[8].mxu0 }
 0x410   :  { %540 = vst [vmem:[#allocation8 + $0x38] sm:$0xff] %v719_v5  ;;  %v433_v6 = vpop.f32.mrb[9].mxu0 }
 0x411   :  { %539 = vst [vmem:[#allocation8 + $0x30] sm:$0xff] %v433_v6 }
 0x417   :  { %v722_v7 = vpop.f32.mrb[2].mxu1 }
 0x418   :  { %542 = vst [vmem:[#allocation8 + $0x48] sm:$0xff] %v722_v7  ;;  %v443_v8 = vpop.f32.mrb[3].mxu1 }
 0x419   :  { %541 = vst [vmem:[#allocation8 + $0x40] sm:$0xff] %v443_v8 }
 0x41f   :  { %v725_v9 = vpop.f32.mrb[4].mxu1 }
 0x420   :  { %544 = vst [vmem:[#allocation8 + $0x58] sm:$0xff] %v725_v9  ;;  %v453_v10 = vpop.f32.mrb[5].mxu1 }
 0x421   :  { %543 = vst [vmem:[#allocation8 + $0x50] sm:$0xff] %v453_v10 }
 0x427   :  { %v728_v11 = vpop.f32.mrb[6].mxu1 }
 0x428   :  { %546 = vst [vmem:[#allocation8 + $0x68] sm:$0xff] %v728_v11  ;;  %v463_v12 = vpop.f32.mrb[7].mxu1 }
 0x429   :  { %545 = vst [vmem:[#allocation8 + $0x60] sm:$0xff] %v463_v12 }
 0x42f   :  { %v731_v13 = vpop.f32.mrb[8].mxu1 }
 0x430   :  { %548 = vst [vmem:[#allocation8 + $0x78] sm:$0xff] %v731_v13  ;;  %v473_v14 = vpop.f32.mrb[9].mxu1 }
 0x431   :  { %547 = vst [vmem:[#allocation8 + $0x70] sm:$0xff] %v473_v14 }
 0x432   :  { %853 = shalt.err (!%p850_p6)
}
 0x433   :  { %s854_s10 = scalar_lea.hbm %s960_s2, 2048 }
 0x434   :  { %p855_p7 = scmp.ne.s32.totalorder %s960_s2, %s854_s10  ;;  %p858_p8 = scmp.lt.u32.totalorder %s854_s10, %s960_s2 }
 0x436   :  { %p860_p9 = pnand %p858_p8, %p855_p7 }
 0x438   :  { %863 = shalt.err (!%p860_p9)
}
 0x439   :  { %560 = dma.vmem_to_hbm [thread:$0]  %s555_s6, 2048, %s960_s2, [#allocation5], %s872_s0, %s872_s0, %s873_s3  }
 0x43a   :  { %868 = dma.done.wait [#allocation5], 2048  }
 0x43b   :  { %869 = vsyncadd [#allocation5], 4294965248 }
 0x43c   :  { %564 = vsyncpa [#allocation4], 1 }
 0x43d   :  { %565 = vsyncpa [#allocation7], 1 }
 0x43e   :  { %566 = vsyncpa [#allocation5], 1 }

</bundles_post_ra>
